<compile_context>
chip_gen: v7x
topology: tpu7x:2x2x1
jax: 0.10.0
libtpu: 0.0.40
codegen_flags: <defaults>
</compile_context>

<pallas_src>
import functools

import jax
import jax.numpy as jnp
from jax.experimental import pallas as pl
from jax.experimental.pallas import tpu as pltpu


def _banded_weight(w, W):
    """PyTorch conv weight (Cout, Cin, 3, 3) -> banded matmul weights.

    Returns wb of shape (3, W*Cin, W*Cout) such that for a row-padded,
    width-packed input xr of shape (H+2, W*Cin):

        out[ho, wo*Cout + co] = sum_dy (xr[ho+dy, :] @ wb[dy])[wo*Cout + co]

    equals a 3x3 "same" convolution (padding=1) at output row ho. The width
    taps and the width zero-padding are encoded as zero bands in wb.
    """
    Cout, Cin, KH, KW = w.shape
    wi = jnp.arange(W)
    wo = jnp.arange(W)
    dx = jnp.arange(KW)
    # mask[d, i, o] = 1 iff input column i == output column o + d - 1
    mask = (wi[None, :, None] == (wo[None, None, :] + dx[:, None, None] - 1))
    mask = mask.astype(w.dtype)
    wt = jnp.transpose(w, (2, 3, 1, 0))                # (KH, KW, Cin, Cout)
    wb = jnp.einsum("dio,ydcf->yicof", mask, wt)       # (KH, W, Cin, W, Cout)
    return wb.reshape(KH, W * Cin, W * Cout)


def make_kernel(H, W, ch_in, ch_out, has_proj):
    """Builds the Pallas kernel for one batch element."""
    WCo = W * ch_out

    def prelu(v, a):
        return jnp.where(v >= 0, v, a * v)

    def banded_conv(rows, wb_ref, b_ref):
        # rows: (H+2, K) row-padded, width-packed value.
        # wb_ref: Ref (3, K, W*Cout) banded weights; b_ref: Ref (1, W*Cout).
        acc = jnp.dot(rows[0:H, :], wb_ref[0],
                      preferred_element_type=jnp.float32)
        acc = acc + jnp.dot(rows[1:H + 1, :], wb_ref[1],
                            preferred_element_type=jnp.float32)
        acc = acc + jnp.dot(rows[2:H + 2, :], wb_ref[2],
                            preferred_element_type=jnp.float32)
        return acc + b_ref[...]                        # broadcast (1, W*Cout)

    def body(alpha_ref, xr_ref, wb1_ref, b1_ref, wb2_ref, b2_ref,
             wbr_ref, br_ref, out_ref, y1p_ref):
        a0 = alpha_ref[0]
        a1 = alpha_ref[1]
        xr = xr_ref[0]                                 # (H+2, W*Cin), f32
        # PReLU(0) == 0, so applying it to the zero-padded rows is exact.
        x_act = prelu(xr, a0)
        y1 = prelu(banded_conv(x_act, wb1_ref, b1_ref), a1)   # (H, W*Cout)

        # Row-pad y1 for the second conv. Border rows re-zeroed every step so
        # this stays correct when the parallel batch axis shards across cores.
        zrow = jnp.zeros((1, WCo), jnp.float32)
        y1p_ref[0:1, :] = zrow
        y1p_ref[H + 1:H + 2, :] = zrow
        y1p_ref[1:H + 1, :] = y1

        h2 = banded_conv(y1p_ref[...], wb2_ref, b2_ref)       # (H, W*Cout)

        if has_proj:
            # Projection conv acts on the *unactivated* input (PyTorch spec).
            res = banded_conv(xr, wbr_ref, br_ref)
        else:
            res = xr[1:H + 1, :]                              # identity residual

        out_ref[0] = h2 + res                                 # lane-dense store

    if has_proj:
        def kernel(alpha_ref, xr_ref, wb1_ref, b1_ref, wb2_ref, b2_ref,
                   wbr_ref, br_ref, out_ref, y1p_ref):
            body(alpha_ref, xr_ref, wb1_ref, b1_ref, wb2_ref, b2_ref,
                 wbr_ref, br_ref, out_ref, y1p_ref)
    else:
        def kernel(alpha_ref, xr_ref, wb1_ref, b1_ref, wb2_ref, b2_ref,
                   out_ref, y1p_ref):
            body(alpha_ref, xr_ref, wb1_ref, b1_ref, wb2_ref, b2_ref,
                 None, None, out_ref, y1p_ref)

    return kernel


@functools.partial(jax.jit, static_argnames=())
def lateral_block_pallas(x, params):
    """x: (B, Cin, H, W) float32 NCHW. Returns (B, Cout, H, W)."""
    B, Cin, H, W = x.shape
    Cout = params["w1"].shape[0]
    has_proj = "wr" in params
    WCi, WCo = W * Cin, W * Cout

    # NCHW -> width-packed rows (B, H, W*Cin), then zero-pad rows only
    # (width padding is folded into the banded weights).
    xr = jnp.transpose(x, (0, 2, 3, 1)).reshape(B, H, WCi)
    xr = jnp.pad(xr, ((0, 0), (1, 1), (0, 0)))

    wb1 = _banded_weight(params["w1"], W)              # (3, W*Cin, W*Cout)
    wb2 = _banded_weight(params["w2"], W)              # (3, W*Cout, W*Cout)
    b1p = jnp.tile(params["b1"], W).reshape(1, WCo)
    b2p = jnp.tile(params["b2"], W).reshape(1, WCo)
    alphas = jnp.stack([params["a0"], params["a1"]]).astype(jnp.float32)

    inputs = [alphas, xr, wb1, b1p, wb2, b2p]
    in_specs = [
        pl.BlockSpec(memory_space=pltpu.MemorySpace.SMEM),             # alphas
        pl.BlockSpec((1, H + 2, WCi), lambda b: (b, 0, 0)),            # x rows
        pl.BlockSpec((3, WCi, WCo), lambda b: (0, 0, 0)),              # wb1
        pl.BlockSpec((1, WCo), lambda b: (0, 0)),                      # b1
        pl.BlockSpec((3, WCo, WCo), lambda b: (0, 0, 0)),              # wb2
        pl.BlockSpec((1, WCo), lambda b: (0, 0)),                      # b2
    ]
    if has_proj:
        wbr = _banded_weight(params["wr"], W)
        brp = jnp.tile(params["br"], W).reshape(1, WCo)
        inputs += [wbr, brp]
        in_specs += [
            pl.BlockSpec((3, WCi, WCo), lambda b: (0, 0, 0)),          # wbr
            pl.BlockSpec((1, WCo), lambda b: (0, 0)),                  # br
        ]

    kernel = make_kernel(H, W, Cin, Cout, has_proj)
    out = pl.pallas_call(
        kernel,
        out_shape=jax.ShapeDtypeStruct((B, H, WCo), jnp.float32),
        grid=(B,),
        in_specs=in_specs,
        out_specs=pl.BlockSpec((1, H, WCo), lambda b: (b, 0, 0)),
        scratch_shapes=[pltpu.VMEM((H + 2, WCo), jnp.float32)],
        compiler_params=pltpu.CompilerParams(
            dimension_semantics=("parallel",)),        # v7x: 2 TCs share batch
    )(*inputs)

    # (B, H, W*Cout) -> (B, Cout, H, W)
    return jnp.transpose(out.reshape(B, H, W, Cout), (0, 3, 1, 2))


# ----------------------------- pure-JAX reference -----------------------------
def _torch_conv2d_ref(x, w, b):
    y = jax.lax.conv_general_dilated(
        x, w, window_strides=(1, 1), padding=((1, 1), (1, 1)),
        dimension_numbers=("NCHW", "OIHW", "NCHW"))
    return y + b[None, :, None, None]


def _prelu_ref(x, a):
    return jnp.where(x >= 0, x, a * x)


def lateral_block_ref(x, params):
    h = _prelu_ref(x, params["a0"])
    h = _torch_conv2d_ref(h, params["w1"], params["b1"])
    h = _prelu_ref(h, params["a1"])
    h = _torch_conv2d_ref(h, params["w2"], params["b2"])
    if "wr" in params:
        xr = _torch_conv2d_ref(x, params["wr"], params["br"])
    else:
        xr = x
    return h + xr


def make_params(key, ch_in, ch_out):
    ks = jax.random.split(key, 6)
    params = {
        "a0": jnp.float32(0.25),                 # PReLU default init
        "a1": jnp.float32(0.20),
        "w1": 0.1 * jax.random.normal(ks[0], (ch_out, ch_in, 3, 3), jnp.float32),
        "b1": 0.1 * jax.random.normal(ks[1], (ch_out,), jnp.float32),
        "w2": 0.1 * jax.random.normal(ks[2], (ch_out, ch_out, 3, 3), jnp.float32),
        "b2": 0.1 * jax.random.normal(ks[3], (ch_out,), jnp.float32),
    }
    if ch_in != ch_out:
        params["wr"] = 0.1 * jax.random.normal(ks[4], (ch_out, ch_in, 3, 3),
                                               jnp.float32)
        params["br"] = 0.1 * jax.random.normal(ks[5], (ch_out,), jnp.float32)
    return params


if __name__ == "__main__":
    key = jax.random.PRNGKey(0)
    B, H, W = 2, 16, 16

    # Case 1: ch_in != ch_out (residual goes through the projection conv).
    k1, k2, kx1, kx2 = jax.random.split(key, 4)
    ch_in, ch_out = 4, 8
    params = make_params(k1, ch_in, ch_out)
    x = jax.random.normal(kx1, (B, ch_in, H, W), jnp.float32)
    out = jax.block_until_ready(lateral_block_pallas(x, params))
    ref = lateral_block_ref(x, params)
    assert out.shape == (B, ch_out, H, W)
    assert jnp.allclose(out, ref, atol=1e-4, rtol=1e-4)

    # Case 2: ch_in == ch_out (identity residual).
    ch_in2 = ch_out2 = 4
    params2 = make_params(k2, ch_in2, ch_out2)
    x2 = jax.random.normal(kx2, (B, ch_in2, H, W), jnp.float32)
    out2 = jax.block_until_ready(lateral_block_pallas(x2, params2))
    ref2 = lateral_block_ref(x2, params2)
    assert out2.shape == (B, ch_out2, H, W)
    assert jnp.allclose(out2, ref2, atol=1e-4, rtol=1e-4)

    print("KERNEL_OK")
</pallas_src>

<mosaic_0001>
module attributes {stable_mosaic.version = 11 : i64} {
  func.func @kernel(%arg0: i32, %arg1: memref<2xf32, #tpu.memory_space<smem>>, %arg2: memref<1x18x64xf32, #tpu.memory_space<vmem>>, %arg3: memref<3x64x128xf32, #tpu.memory_space<vmem>>, %arg4: memref<1x128xf32, #tpu.memory_space<vmem>>, %arg5: memref<3x128x128xf32, #tpu.memory_space<vmem>>, %arg6: memref<1x128xf32, #tpu.memory_space<vmem>>, %arg7: memref<3x64x128xf32, #tpu.memory_space<vmem>>, %arg8: memref<1x128xf32, #tpu.memory_space<vmem>>, %arg9: memref<1x16x128xf32, #tpu.memory_space<vmem>>, %arg10: memref<18x128xf32, #tpu.memory_space<vmem>>) attributes {dimension_semantics = [#tpu.dimension_semantics<parallel>], iteration_bounds = array<i64: 2>, scalar_prefetch = 0 : i64, scratch_operands = 1 : i64, tpu.core_type = #tpu.core_type<tc>, window_params = [{transform_indices = @transform_0, window_bounds = array<i64: 2>}, {transform_indices = @transform_1, window_bounds = array<i64: 1, 18, 64>}, {pipeline_mode = #tpu.pipeline_mode<synchronous>, transform_indices = @transform_2, window_bounds = array<i64: 3, 64, 128>}, {pipeline_mode = #tpu.pipeline_mode<synchronous>, transform_indices = @transform_3, window_bounds = array<i64: 1, 128>}, {pipeline_mode = #tpu.pipeline_mode<synchronous>, transform_indices = @transform_4, window_bounds = array<i64: 3, 128, 128>}, {pipeline_mode = #tpu.pipeline_mode<synchronous>, transform_indices = @transform_5, window_bounds = array<i64: 1, 128>}, {pipeline_mode = #tpu.pipeline_mode<synchronous>, transform_indices = @transform_6, window_bounds = array<i64: 3, 64, 128>}, {pipeline_mode = #tpu.pipeline_mode<synchronous>, transform_indices = @transform_7, window_bounds = array<i64: 1, 128>}, {transform_indices = @transform_8, window_bounds = array<i64: 1, 16, 128>}]} {
    %c0 = arith.constant 0 : index
    %0 = memref.load %arg1[%c0] : memref<2xf32, #tpu.memory_space<smem>>
    %c1 = arith.constant 1 : index
    %1 = memref.load %arg1[%c1] : memref<2xf32, #tpu.memory_space<smem>>
    %c0_0 = arith.constant 0 : index
    %c0_1 = arith.constant 0 : index
    %c0_2 = arith.constant 0 : index
    %2 = vector.load %arg2[%c0_0, %c0_1, %c0_2] : memref<1x18x64xf32, #tpu.memory_space<vmem>>, vector<1x18x64xf32>
    %3 = vector.shape_cast %2 : vector<1x18x64xf32> to vector<18x64xf32>
    %cst = arith.constant 0.000000e+00 : f32
    %4 = vector.broadcast %cst : f32 to vector<18x64xf32>
    %5 = arith.cmpf oge, %3, %4 : vector<18x64xf32>
    %6 = vector.broadcast %0 : f32 to vector<18x64xf32>
    %7 = arith.mulf %6, %3 : vector<18x64xf32>
    %8 = arith.select %5, %3, %7 : vector<18x64xi1>, vector<18x64xf32>
    %9 = vector.extract_strided_slice %8 {offsets = [0, 0], sizes = [16, 64], strides = [1, 1]} : vector<18x64xf32> to vector<16x64xf32>
    %c0_3 = arith.constant 0 : index
    %c0_4 = arith.constant 0 : index
    %c0_5 = arith.constant 0 : index
    %10 = vector.load %arg3[%c0_3, %c0_4, %c0_5] : memref<3x64x128xf32, #tpu.memory_space<vmem>>, vector<1x64x128xf32>
    %11 = vector.shape_cast %10 : vector<1x64x128xf32> to vector<64x128xf32>
    %cst_6 = arith.constant dense<0.000000e+00> : vector<16x128xf32>
    %12 = tpu.matmul %9, %11, %cst_6 {dimension_numbers = #tpu.dot_dimension_numbers<[1], [0], [0], [1], [0, 0, 1, 1], [], []>} : vector<16x64xf32>, vector<64x128xf32>, vector<16x128xf32> -> vector<16x128xf32>
    %13 = vector.extract_strided_slice %8 {offsets = [1, 0], sizes = [16, 64], strides = [1, 1]} : vector<18x64xf32> to vector<16x64xf32>
    %c1_7 = arith.constant 1 : index
    %c0_8 = arith.constant 0 : index
    %c0_9 = arith.constant 0 : index
    %14 = vector.load %arg3[%c1_7, %c0_8, %c0_9] : memref<3x64x128xf32, #tpu.memory_space<vmem>>, vector<1x64x128xf32>
    %15 = vector.shape_cast %14 : vector<1x64x128xf32> to vector<64x128xf32>
    %cst_10 = arith.constant dense<0.000000e+00> : vector<16x128xf32>
    %16 = tpu.matmul %13, %15, %cst_10 {dimension_numbers = #tpu.dot_dimension_numbers<[1], [0], [0], [1], [0, 0, 1, 1], [], []>} : vector<16x64xf32>, vector<64x128xf32>, vector<16x128xf32> -> vector<16x128xf32>
    %17 = arith.addf %12, %16 : vector<16x128xf32>
    %18 = vector.extract_strided_slice %8 {offsets = [2, 0], sizes = [16, 64], strides = [1, 1]} : vector<18x64xf32> to vector<16x64xf32>
    %c2 = arith.constant 2 : index
    %c0_11 = arith.constant 0 : index
    %c0_12 = arith.constant 0 : index
    %19 = vector.load %arg3[%c2, %c0_11, %c0_12] : memref<3x64x128xf32, #tpu.memory_space<vmem>>, vector<1x64x128xf32>
    %20 = vector.shape_cast %19 : vector<1x64x128xf32> to vector<64x128xf32>
    %cst_13 = arith.constant dense<0.000000e+00> : vector<16x128xf32>
    %21 = tpu.matmul %18, %20, %cst_13 {dimension_numbers = #tpu.dot_dimension_numbers<[1], [0], [0], [1], [0, 0, 1, 1], [], []>} : vector<16x64xf32>, vector<64x128xf32>, vector<16x128xf32> -> vector<16x128xf32>
    %22 = arith.addf %17, %21 : vector<16x128xf32>
    %c0_14 = arith.constant 0 : index
    %c0_15 = arith.constant 0 : index
    %23 = vector.load %arg4[%c0_14, %c0_15] : memref<1x128xf32, #tpu.memory_space<vmem>>, vector<1x128xf32>
    %24 = vector.broadcast %23 : vector<1x128xf32> to vector<16x128xf32>
    %25 = arith.addf %22, %24 : vector<16x128xf32>
    %cst_16 = arith.constant 0.000000e+00 : f32
    %26 = vector.broadcast %cst_16 : f32 to vector<16x128xf32>
    %27 = arith.cmpf oge, %25, %26 : vector<16x128xf32>
    %28 = vector.broadcast %1 : f32 to vector<16x128xf32>
    %29 = arith.mulf %28, %25 : vector<16x128xf32>
    %30 = arith.select %27, %25, %29 : vector<16x128xi1>, vector<16x128xf32>
    %cst_17 = arith.constant 0.000000e+00 : f32
    %31 = vector.broadcast %cst_17 : f32 to vector<1x128xf32>
    %c0_18 = arith.constant 0 : index
    %c0_19 = arith.constant 0 : index
    %32 = vector.load %arg10[%c0_18, %c0_19] : memref<18x128xf32, #tpu.memory_space<vmem>>, vector<1x128xf32>
    tpu.vector_store %arg10[%c0_18, %c0_19], %31 {strides = array<i32>} : memref<18x128xf32, #tpu.memory_space<vmem>>, vector<1x128xf32>,
    %c17 = arith.constant 17 : index
    %c0_20 = arith.constant 0 : index
    %33 = vector.load %arg10[%c17, %c0_20] : memref<18x128xf32, #tpu.memory_space<vmem>>, vector<1x128xf32>
    tpu.vector_store %arg10[%c17, %c0_20], %31 {strides = array<i32>} : memref<18x128xf32, #tpu.memory_space<vmem>>, vector<1x128xf32>,
    %c1_21 = arith.constant 1 : index
    %c0_22 = arith.constant 0 : index
    %34 = vector.load %arg10[%c1_21, %c0_22] : memref<18x128xf32, #tpu.memory_space<vmem>>, vector<16x128xf32>
    tpu.vector_store %arg10[%c1_21, %c0_22], %30 {strides = array<i32>} : memref<18x128xf32, #tpu.memory_space<vmem>>, vector<16x128xf32>,
    %c0_23 = arith.constant 0 : index
    %c0_24 = arith.constant 0 : index
    %35 = vector.load %arg10[%c0_23, %c0_24] : memref<18x128xf32, #tpu.memory_space<vmem>>, vector<18x128xf32>
    %36 = vector.extract_strided_slice %35 {offsets = [0, 0], sizes = [16, 128], strides = [1, 1]} : vector<18x128xf32> to vector<16x128xf32>
    %c0_25 = arith.constant 0 : index
    %c0_26 = arith.constant 0 : index
    %c0_27 = arith.constant 0 : index
    %37 = vector.load %arg5[%c0_25, %c0_26, %c0_27] : memref<3x128x128xf32, #tpu.memory_space<vmem>>, vector<1x128x128xf32>
    %38 = vector.shape_cast %37 : vector<1x128x128xf32> to vector<128x128xf32>
    %cst_28 = arith.constant dense<0.000000e+00> : vector<16x128xf32>
    %39 = tpu.matmul %36, %38, %cst_28 {dimension_numbers = #tpu.dot_dimension_numbers<[1], [0], [0], [1], [0, 0, 1, 1], [], []>} : vector<16x128xf32>, vector<128x128xf32>, vector<16x128xf32> -> vector<16x128xf32>
    %40 = vector.extract_strided_slice %35 {offsets = [1, 0], sizes = [16, 128], strides = [1, 1]} : vector<18x128xf32> to vector<16x128xf32>
    %c1_29 = arith.constant 1 : index
    %c0_30 = arith.constant 0 : index
    %c0_31 = arith.constant 0 : index
    %41 = vector.load %arg5[%c1_29, %c0_30, %c0_31] : memref<3x128x128xf32, #tpu.memory_space<vmem>>, vector<1x128x128xf32>
    %42 = vector.shape_cast %41 : vector<1x128x128xf32> to vector<128x128xf32>
    %cst_32 = arith.constant dense<0.000000e+00> : vector<16x128xf32>
    %43 = tpu.matmul %40, %42, %cst_32 {dimension_numbers = #tpu.dot_dimension_numbers<[1], [0], [0], [1], [0, 0, 1, 1], [], []>} : vector<16x128xf32>, vector<128x128xf32>, vector<16x128xf32> -> vector<16x128xf32>
    %44 = arith.addf %39, %43 : vector<16x128xf32>
    %45 = vector.extract_strided_slice %35 {offsets = [2, 0], sizes = [16, 128], strides = [1, 1]} : vector<18x128xf32> to vector<16x128xf32>
    %c2_33 = arith.constant 2 : index
    %c0_34 = arith.constant 0 : index
    %c0_35 = arith.constant 0 : index
    %46 = vector.load %arg5[%c2_33, %c0_34, %c0_35] : memref<3x128x128xf32, #tpu.memory_space<vmem>>, vector<1x128x128xf32>
    %47 = vector.shape_cast %46 : vector<1x128x128xf32> to vector<128x128xf32>
    %cst_36 = arith.constant dense<0.000000e+00> : vector<16x128xf32>
    %48 = tpu.matmul %45, %47, %cst_36 {dimension_numbers = #tpu.dot_dimension_numbers<[1], [0], [0], [1], [0, 0, 1, 1], [], []>} : vector<16x128xf32>, vector<128x128xf32>, vector<16x128xf32> -> vector<16x128xf32>
    %49 = arith.addf %44, %48 : vector<16x128xf32>
    %c0_37 = arith.constant 0 : index
    %c0_38 = arith.constant 0 : index
    %50 = vector.load %arg6[%c0_37, %c0_38] : memref<1x128xf32, #tpu.memory_space<vmem>>, vector<1x128xf32>
    %51 = vector.broadcast %50 : vector<1x128xf32> to vector<16x128xf32>
    %52 = arith.addf %49, %51 : vector<16x128xf32>
    %53 = vector.extract_strided_slice %3 {offsets = [0, 0], sizes = [16, 64], strides = [1, 1]} : vector<18x64xf32> to vector<16x64xf32>
    %c0_39 = arith.constant 0 : index
    %c0_40 = arith.constant 0 : index
    %c0_41 = arith.constant 0 : index
    %54 = vector.load %arg7[%c0_39, %c0_40, %c0_41] : memref<3x64x128xf32, #tpu.memory_space<vmem>>, vector<1x64x128xf32>
    %55 = vector.shape_cast %54 : vector<1x64x128xf32> to vector<64x128xf32>
    %cst_42 = arith.constant dense<0.000000e+00> : vector<16x128xf32>
    %56 = tpu.matmul %53, %55, %cst_42 {dimension_numbers = #tpu.dot_dimension_numbers<[1], [0], [0], [1], [0, 0, 1, 1], [], []>} : vector<16x64xf32>, vector<64x128xf32>, vector<16x128xf32> -> vector<16x128xf32>
    %57 = vector.extract_strided_slice %3 {offsets = [1, 0], sizes = [16, 64], strides = [1, 1]} : vector<18x64xf32> to vector<16x64xf32>
    %c1_43 = arith.constant 1 : index
    %c0_44 = arith.constant 0 : index
    %c0_45 = arith.constant 0 : index
    %58 = vector.load %arg7[%c1_43, %c0_44, %c0_45] : memref<3x64x128xf32, #tpu.memory_space<vmem>>, vector<1x64x128xf32>
    %59 = vector.shape_cast %58 : vector<1x64x128xf32> to vector<64x128xf32>
    %cst_46 = arith.constant dense<0.000000e+00> : vector<16x128xf32>
    %60 = tpu.matmul %57, %59, %cst_46 {dimension_numbers = #tpu.dot_dimension_numbers<[1], [0], [0], [1], [0, 0, 1, 1], [], []>} : vector<16x64xf32>, vector<64x128xf32>, vector<16x128xf32> -> vector<16x128xf32>
    %61 = arith.addf %56, %60 : vector<16x128xf32>
    %62 = vector.extract_strided_slice %3 {offsets = [2, 0], sizes = [16, 64], strides = [1, 1]} : vector<18x64xf32> to vector<16x64xf32>
    %c2_47 = arith.constant 2 : index
    %c0_48 = arith.constant 0 : index
    %c0_49 = arith.constant 0 : index
    %63 = vector.load %arg7[%c2_47, %c0_48, %c0_49] : memref<3x64x128xf32, #tpu.memory_space<vmem>>, vector<1x64x128xf32>
    %64 = vector.shape_cast %63 : vector<1x64x128xf32> to vector<64x128xf32>
    %cst_50 = arith.constant dense<0.000000e+00> : vector<16x128xf32>
    %65 = tpu.matmul %62, %64, %cst_50 {dimension_numbers = #tpu.dot_dimension_numbers<[1], [0], [0], [1], [0, 0, 1, 1], [], []>} : vector<16x64xf32>, vector<64x128xf32>, vector<16x128xf32> -> vector<16x128xf32>
    %66 = arith.addf %61, %65 : vector<16x128xf32>
    %c0_51 = arith.constant 0 : index
    %c0_52 = arith.constant 0 : index
    %67 = vector.load %arg8[%c0_51, %c0_52] : memref<1x128xf32, #tpu.memory_space<vmem>>, vector<1x128xf32>
    %68 = vector.broadcast %67 : vector<1x128xf32> to vector<16x128xf32>
    %69 = arith.addf %66, %68 : vector<16x128xf32>
    %70 = arith.addf %52, %69 : vector<16x128xf32>
    %c0_53 = arith.constant 0 : index
    %c0_54 = arith.constant 0 : index
    %c0_55 = arith.constant 0 : index
    %71 = vector.load %arg9[%c0_53, %c0_54, %c0_55] : memref<1x16x128xf32, #tpu.memory_space<vmem>>, vector<1x16x128xf32>
    %72 = vector.shape_cast %71 : vector<1x16x128xf32> to vector<16x128xf32>
    %73 = vector.shape_cast %70 : vector<16x128xf32> to vector<1x16x128xf32>
    tpu.vector_store %arg9[%c0_53, %c0_54, %c0_55], %73 {strides = array<i32>} : memref<1x16x128xf32, #tpu.memory_space<vmem>>, vector<1x16x128xf32>,
    return
  }
  func.func @transform_0(%arg0: i32) -> i32 {
    %c0_i32 = arith.constant 0 : i32
    %c0_i32_0 = arith.constant 0 : i32
    return %c0_i32 : i32
  }
  func.func @transform_1(%arg0: i32) -> (i32, i32, i32) {
    %c0_i32 = arith.constant 0 : i32
    %c0_i32_0 = arith.constant 0 : i32
    %c0_i32_1 = arith.constant 0 : i32
    return %arg0, %c0_i32, %c0_i32_0 : i32, i32, i32
  }
  func.func @transform_2(%arg0: i32) -> (i32, i32, i32) {
    %c0_i32 = arith.constant 0 : i32
    %c0_i32_0 = arith.constant 0 : i32
    %c0_i32_1 = arith.constant 0 : i32
    %c0_i32_2 = arith.constant 0 : i32
    return %c0_i32, %c0_i32_0, %c0_i32_1 : i32, i32, i32
  }
  func.func @transform_3(%arg0: i32) -> (i32, i32) {
    %c0_i32 = arith.constant 0 : i32
    %c0_i32_0 = arith.constant 0 : i32
    %c0_i32_1 = arith.constant 0 : i32
    return %c0_i32, %c0_i32_0 : i32, i32
  }
  func.func @transform_4(%arg0: i32) -> (i32, i32, i32) {
    %c0_i32 = arith.constant 0 : i32
    %c0_i32_0 = arith.constant 0 : i32
    %c0_i32_1 = arith.constant 0 : i32
    %c0_i32_2 = arith.constant 0 : i32
    return %c0_i32, %c0_i32_0, %c0_i32_1 : i32, i32, i32
  }
  func.func @transform_5(%arg0: i32) -> (i32, i32) {
    %c0_i32 = arith.constant 0 : i32
    %c0_i32_0 = arith.constant 0 : i32
    %c0_i32_1 = arith.constant 0 : i32
    return %c0_i32, %c0_i32_0 : i32, i32
  }
  func.func @transform_6(%arg0: i32) -> (i32, i32, i32) {
    %c0_i32 = arith.constant 0 : i32
    %c0_i32_0 = arith.constant 0 : i32
    %c0_i32_1 = arith.constant 0 : i32
    %c0_i32_2 = arith.constant 0 : i32
    return %c0_i32, %c0_i32_0, %c0_i32_1 : i32, i32, i32
  }
  func.func @transform_7(%arg0: i32) -> (i32, i32) {
    %c0_i32 = arith.constant 0 : i32
    %c0_i32_0 = arith.constant 0 : i32
    %c0_i32_1 = arith.constant 0 : i32
    return %c0_i32, %c0_i32_0 : i32, i32
  }
  func.func @transform_8(%arg0: i32) -> (i32, i32, i32) {
    %c0_i32 = arith.constant 0 : i32
    %c0_i32_0 = arith.constant 0 : i32
    %c0_i32_1 = arith.constant 0 : i32
    return %arg0, %c0_i32, %c0_i32_0 : i32, i32, i32
  }
}

</mosaic_0001>

<bundles_post_ra>
// kernel: tile.18
= control target key start
LH: loop header
LB: loop body
LE: loop exit
PB: predicated region body
PF: predicated region fallthrough
CT: control target
= control target key end

     0   :  { %s28_s0 = inlined_call_operand.vmem [shape: f32[8], index: 0, kind: input, shape index: {}]   ;;  %s29_s1 = inlined_call_operand.vmem [shape: f32[16,8], index: 1, kind: output, shape index: {}]  }
   0x1   :  { %v4_v0 = vld [vmem:[%s28_s0] ss:$0 sm:$0xff] }
   0x2   :  { %5 = vst [vmem:[%s29_s1] sm:$0xff] %v4_v0  ;;  %8 = vst [vmem:[%s29_s1 + $0x8] sm:$0xff] %v4_v0 }

// kernel: tile.19
= control target key start
LH: loop header
LB: loop body
LE: loop exit
PB: predicated region body
PF: predicated region fallthrough
CT: control target
= control target key end

     0   :  { %s131_s10 = smov 120   ;;  %s132_s11 = smov 104   ;;  %vm3_vm0 = vcmask 64512   ;;  %vm9_vm1 = vcmask 1048512   ;;  %vm15_vm2 = vcmask 982912   ;;  %vm21_vm3 = vcmask 917312   ;;  %s207_s0 = inlined_call_operand.vmem [shape: f32[16,8], index: 0, kind: input, shape index: {}]   ;;  %s208_s1 = inlined_call_operand.vmem [shape: f32[1,128], index: 1, kind: output, shape index: {}]  }
   0x1   :  { %v101_v0 = vld [vmem:[%s207_s0 + $0xf] sm:$0x1]   ;;  %v103_v1 = vld [vmem:[%s207_s0 + $0xd] sm:$0x1]   ;;  %v102_v2 = vld [vmem:[%s207_s0 + $0xe] sm:$0x1]  }
   0x2   :  { %7 = vrot.lane.b32.xlu0 %v101_v0, %s131_s10  ;;  %19 = vrot.lane.b32.xlu1 %v103_v1, %s132_s11  ;;  %v104_v3 = vld [vmem:[%s207_s0 + $0xc] sm:$0x1]   ;;  %s133_s16 = smov 112   ;;  %s134_s17 = smov 96   ;;  %v105_v4 = vld [vmem:[%s207_s0 + $0xb] sm:$0x1]  }
   0x3   :  { %v106_v5 = vld [vmem:[%s207_s0 + $0xa] sm:$0x1]   ;;  %v2_v6 = vld [vmem:[%s207_s0] sm:$0x1]   ;;  %s135_s24 = smov 88   ;;  %s136_s25 = smov 80  }
   0x4   :  { %4 = vst.msk [vmem:[#allocation0] sm:$0x1] %vm3_vm0, %v2_v6   ;;  %v107_v7 = vld [vmem:[%s207_s0 + $0x9] sm:$0x1]   ;;  %v108_v8 = vld [vmem:[%s207_s0 + $0x8] sm:$0x1]  }
   0x5   :  { %s137_s30 = smov 72   ;;  %s138_s2 = smov 64   ;;  %v109_v9 = vld [vmem:[%s207_s0 + $0x7] sm:$0x1]   ;;  %v110_v10 = vld [vmem:[%s207_s0 + $0x6] sm:$0x1]  }
   0x6   :  { %13 = vrot.lane.b32.xlu0 %v102_v2, %s133_s16  ;;  %25 = vrot.lane.b32.xlu1 %v104_v3, %s134_s17  ;;  %s139_s7 = smov 56   ;;  %s140_s8 = smov 48   ;;  %v111_v11 = vld [vmem:[%s207_s0 + $0x5] sm:$0x1]   ;;  %v112_v12 = vld [vmem:[%s207_s0 + $0x4] sm:$0x1]  }
   0x7   :  { %s141_s13 = smov 40   ;;  %s142_s14 = smov 32   ;;  %v113_v13 = vld [vmem:[%s207_s0 + $0x3] sm:$0x1]   ;;  %v114_v14 = vld [vmem:[%s207_s0 + $0x2] sm:$0x1]  }
   0x8   :  { %s143_s19 = smov 24   ;;  %s144_s20 = smov 16   ;;  %v115_v15 = vld [vmem:[%s207_s0 + $0x1] sm:$0x1]   ;;  %vm27_vm4 = vcmask 851712   ;;  %vm33_vm5 = vcmask 786112  }
   0x9   :  { %s145_s0 = smov 8   ;;  %vm39_vm6 = vcmask 720512   ;;  %vm45_vm7 = vcmask 654912   ;;  %vm51_vm8 = vcmask 589312   ;;  %vm57_vm9 = vcmask 523712  }
   0xa   :  { %31 = vrot.lane.b32.xlu0 %v105_v4, %s135_s24  ;;  %37 = vrot.lane.b32.xlu1 %v106_v5, %s136_s25  ;;  %vm63_vm10 = vcmask 458112   ;;  %vm69_vm11 = vcmask 392512   ;;  %vm75_vm12 = vcmask 326912   ;;  %vm81_vm13 = vcmask 261312  }
   0xb   :  { %vm87_vm14 = vcmask 195712   ;;  %vm93_vm15 = vcmask 130112  }
   0xe   :  { %43 = vrot.lane.b32.xlu0 %v107_v7, %s137_s30  ;;  %49 = vrot.lane.b32.xlu1 %v108_v8, %s138_s2 }
  0x12   :  { %55 = vrot.lane.b32.xlu0 %v109_v9, %s139_s7  ;;  %61 = vrot.lane.b32.xlu1 %v110_v10, %s140_s8 }
  0x16   :  { %67 = vrot.lane.b32.xlu0 %v111_v11, %s141_s13  ;;  %73 = vrot.lane.b32.xlu1 %v112_v12, %s142_s14 }
  0x1a   :  { %79 = vrot.lane.b32.xlu0 %v113_v13, %s143_s19  ;;  %85 = vrot.lane.b32.xlu1 %v114_v14, %s144_s20 }
  0x1e   :  { %91 = vrot.lane.b32.xlu0 %v115_v15, %s145_s0 }
  0x74   :  { %v8_v16 = vpop.permute.xlu0 %7   ;;  %v20_v17 = vpop.permute.xlu1 %19  }
  0x75   :  { %10 = vst.msk [vmem:[#allocation0] sm:$0x1] %vm9_vm1, %v8_v16  }
  0x78   :  { %v14_v18 = vpop.permute.xlu0 %13   ;;  %v26_v19 = vpop.permute.xlu1 %25  }
  0x79   :  { %16 = vst.msk [vmem:[#allocation0] sm:$0x1] %vm15_vm2, %v14_v18  }
  0x7a   :  { %22 = vst.msk [vmem:[#allocation0] sm:$0x1] %vm21_vm3, %v20_v17  }
  0x7b   :  { %28 = vst.msk [vmem:[#allocation0] sm:$0x1] %vm27_vm4, %v26_v19  }
  0x7c   :  { %v32_v20 = vpop.permute.xlu0 %31   ;;  %v38_v21 = vpop.permute.xlu1 %37  }
  0x7d   :  { %34 = vst.msk [vmem:[#allocation0] sm:$0x1] %vm33_vm5, %v32_v20  }
  0x7e   :  { %40 = vst.msk [vmem:[#allocation0] sm:$0x1] %vm39_vm6, %v38_v21  }
  0x80   :  { %v44_v22 = vpop.permute.xlu0 %43   ;;  %v50_v23 = vpop.permute.xlu1 %49  }
  0x81   :  { %46 = vst.msk [vmem:[#allocation0] sm:$0x1] %vm45_vm7, %v44_v22  }
  0x82   :  { %52 = vst.msk [vmem:[#allocation0] sm:$0x1] %vm51_vm8, %v50_v23  }
  0x84   :  { %v56_v24 = vpop.permute.xlu0 %55   ;;  %v62_v25 = vpop.permute.xlu1 %61  }
  0x85   :  { %58 = vst.msk [vmem:[#allocation0] sm:$0x1] %vm57_vm9, %v56_v24  }
  0x86   :  { %64 = vst.msk [vmem:[#allocation0] sm:$0x1] %vm63_vm10, %v62_v25  }
  0x88   :  { %v68_v26 = vpop.permute.xlu0 %67   ;;  %v74_v27 = vpop.permute.xlu1 %73  }
  0x89   :  { %70 = vst.msk [vmem:[#allocation0] sm:$0x1] %vm69_vm11, %v68_v26  }
  0x8a   :  { %76 = vst.msk [vmem:[#allocation0] sm:$0x1] %vm75_vm12, %v74_v27  }
  0x8c   :  { %v80_v28 = vpop.permute.xlu0 %79   ;;  %v86_v29 = vpop.permute.xlu1 %85  }
  0x8d   :  { %82 = vst.msk [vmem:[#allocation0] sm:$0x1] %vm81_vm13, %v80_v28  }
  0x8e   :  { %88 = vst.msk [vmem:[#allocation0] sm:$0x1] %vm87_vm14, %v86_v29  }
  0x90   :  { %v92_v30 = vpop.permute.xlu0 %91  }
  0x91   :  { %94 = vst.msk [vmem:[#allocation0] sm:$0x1] %vm93_vm15, %v92_v30  }
  0x98   :  { %v98_v31 = vld [vmem:[#allocation0] sm:$0x1] }
  0x99   :  { %100 = vst [vmem:[%s208_s1] sm:$0x1] %v98_v31 }

// kernel: lateral_block_pallas.1
= control target key start
LH: loop header
LB: loop body
LE: loop exit
PB: predicated region body
PF: predicated region fallthrough
CT: control target
= control target key end

     0   :  { %13 = vsyncpa [#allocation4], 0  ;;  %s2031_s27 = smov 0   ;;  %s2445_s0 = inlined_call_operand.vmem [shape: f32[2], index: 0, kind: input, shape index: {}]   ;;  %s2446_s1 = inlined_call_operand.vmem [shape: f32[2,18,64], index: 1, kind: input, shape index: {}]   ;;  %s2447_s2 = inlined_call_operand.vmem [shape: f32[3,64,128], index: 2, kind: input, shape index: {}]   ;;  %s2448_s3 = inlined_call_operand.vmem [shape: f32[1,128], index: 3, kind: input, shape index: {}]   ;;  %s2449_s4 = inlined_call_operand.vmem [shape: f32[3,128,128], index: 4, kind: input, shape index: {}]   ;;  %s2450_s5 = inlined_call_operand.vmem [shape: f32[1,128], index: 5, kind: input, shape index: {}]   ;;  %s2451_s6 = inlined_call_operand.vmem [shape: f32[3,64,128], index: 6, kind: input, shape index: {}]   ;;  %s2452_s7 = inlined_call_operand.vmem [shape: f32[1,128], index: 7, kind: input, shape index: {}]   ;;  %s2453_s8 = inlined_call_operand.vmem [shape: f32[2,16,128], index: 8, kind: output, shape index: {}]  }
   0x1 LB: > { %s2037_s28 = sadd.s32 4294967295, %s1982_s27   ;;  %p1302_p0 = scmp.ge.s32.totalorder %s1982_s27, 1  ;;  %s1982_s27 = sphi %s2031_s27, %s19_s27  }
   0x2   : > { %p223_p1 = scmp.lt.s32.totalorder %s1982_s27, 3  ;;  %s236_s9 = sshll.u32 %s2445_s0, 4  ;;  %s237_s9 = int_to_ptr.vmem [resolvable:$true] %s236_s9 }
   0x3   : > { %p1945_p3 = scmp.eq.s32.totalorder %s2037_s28, 0  ;;  %s1957_s11 = scalar_lea.vmem %s237_s9, 16 }
   0x4   : > { %p2044_p2 = pnand %p1302_p0, %p223_p1  ;;  %p1958_p6 = scmp.ne.s32.totalorder %s237_s9, %s1957_s11 }
   0x5   : > { %p1965_p10 = scmp.lt.s32.totalorder %s237_s9, %s237_s9  ;;  %p1966_p11 = scmp.lt.s32.totalorder %s1957_s11, %s1957_s11 }
   0x6   : > { %p1941_p4 = pneg %p2044_p2 }
   0x7   : > { %p1967_p12 = por %p1966_p11, %p1965_p10 }
   0x8   : > { %p1942_p5 = pnand %p1945_p3, %p1941_p4 }
   0xa   : > { %p1959_p7 = pneg %p1942_p5 }
   0xc   : > { %p1960_p8 = pnand %p1959_p7, %p1958_p6 }
   0xe   : > { %p1961_p9 = pneg %p1960_p8 }
  0x10   : > { %p1968_p13 = pnand %p1967_p12, %p1961_p9 }
  0x12   : > { %1971 = shalt.err (!%p1968_p13)
}
  0x13   : > { %s1984_s12 = smov [#allocation3]   ;;  %275 = sbr.rel (%p2044_p2) target bundleno = 589 (0x24d), region = 52 }
  0x14   : > { %1944 = dma.vmem_to_smem (!%p1942_p5), %s237_s9, 16, %s1984_s12, [#allocation4]  }
  0x1a   : > { %1977 = dma.done.wait (%p1945_p3), [#allocation4], 16  }
  0x1b   : > { %1979 = vsyncadd (%p1945_p3), [#allocation4], 4294967280 }
  0x1c   : > { %281 = sfence }
  0x1d   : > { %v1311_v0 = vld [vmem:[%s2447_s2 + $0x40] sm:$0xff]  ;;  %v1312_v1 = vld [vmem:[%s2447_s2 + $0x48] sm:$0xff]  ;;  %v1313_v2 = vld [vmem:[%s2447_s2 + $0x50] sm:$0xff]  ;;  %p310_p0 = scmp.lt.s32.totalorder %s2037_s28, 1  ;;  %s320_s19 = sld [smem:[#allocation3]]  ;;  %vm355_vm3 = vcmask 1046528  }
  0x1e   : > { %v1726_v3 = vpack.c.bf16 %v1312_v1, %v1311_v0  ;;  %v1314_v4 = vld [vmem:[%s2447_s2 + $0x58] sm:$0xff]  ;;  %v1315_v6 = vld [vmem:[%s2447_s2 + $0x60] sm:$0xff]  ;;  %v1316_v7 = vld [vmem:[%s2447_s2 + $0x68] sm:$0xff]  ;;  %vm361_vm4 = vcmask 523264   ;;  %vm529_vm5 = vcmask 1045504   ;;  %s1310_s18 = sld [smem:[#allocation3 + $0x1]] }
  0x1f   : > { %v1730_v5 = vpack.c.bf16 %v1314_v4, %v1313_v2  ;;  %s2456_s28 = smov (!%p310_p0, %s2037_s28), 1  ;;  %v1734_v8 = vpack.c.bf16 %v1316_v7, %v1315_v6  ;;  %v1317_v9 = vld [vmem:[%s2447_s2 + $0x70] sm:$0xff]  ;;  %v1318_v10 = vld [vmem:[%s2447_s2 + $0x78] sm:$0xff]  ;;  %v335_v18 = vld [vmem:[%s2447_s2] sm:$0xff] }
  0x20   : > { %1727 = vmatprep.subr.bf16.mxu0 %v1726_v3  ;;  %s1936_s26 = smul.u32 24, %s2456_s28  ;;  %v1738_v17 = vpack.c.bf16 %v1318_v10, %v1317_v9  ;;  %v639_v20 = vld [vmem:[%s2449_s4] sm:$0xff]  ;;  %v640_v21 = vld [vmem:[%s2449_s4 + $0x8] sm:$0xff]  ;;  %v641_v26 = vld [vmem:[%s2449_s4 + $0x10] sm:$0xff]  ;;  %s1392_s15 = sshll.u32 %s2456_s28, 4 }
  0x21   : > { %1729 = vmatpush3.bf16.msra.mxu0 %v1726_v3  ;;  %v336_v24 = vld [vmem:[%s2447_s2 + $0x8] sm:$0xff]  ;;  %v1806_v25 = vpack.c.bf16 %v640_v21, %v639_v20  ;;  %v642_v27 = vld [vmem:[%s2449_s4 + $0x18] sm:$0xff]  ;;  %v643_v31 = vld [vmem:[%s2449_s4 + $0x20] sm:$0xff]  ;;  %s319_s20 = scalar_lea.vmem %s2453_s8, %s1392_s15 }
  0x22   : > { %1731 = vmatprep.subr.bf16.mxu0 %v1730_v5  ;;  %s314_s13 = scalar_lea.vmem %s2446_s1, %s1936_s26  ;;  %v644_v33 = vld [vmem:[%s2449_s4 + $0x28] sm:$0xff]  ;;  %v1742_v35 = vpack.c.bf16 %v336_v24, %v335_v18  ;;  %v1810_v36 = vpack.c.bf16 %v642_v27, %v641_v26  ;;  %v337_v37 = vld [vmem:[%s2447_s2 + $0x10] sm:$0xff]  ;;  %v338_v38 = vld [vmem:[%s2447_s2 + $0x18] sm:$0xff] }
  0x23   : > { %v328_v11 = vstv %s320_s19  ;;  %v2091_v12 = vld [vmem:[%s314_s13] sm:$0xff]  ;;  %v2093_v13 = vld [vmem:[%s314_s13 + $0x8] sm:$0xff]  ;;  %v2095_v14 = vld [vmem:[%s314_s13 + $0x10] sm:$0x3]  ;;  %1807 = vmatprep.subr.bf16.mxu1 %v1806_v25  ;;  %v1814_v39 = vpack.c.bf16 %v644_v33, %v643_v31  ;;  %v1746_v43 = vpack.c.bf16 %v338_v38, %v337_v37 }
  0x24   : > { %vm325_vm0 = vcmp.ge.f32.partialorder %v2091_v12, 0.0  ;;  %vm326_vm1 = vcmp.ge.f32.partialorder %v2093_v13, 0.0  ;;  %v329_v15 = vmul.f32 %v328_v11, %v2091_v12  ;;  %v330_v16 = vmul.f32 %v328_v11, %v2093_v13  ;;  %1809 = vmatpush3.bf16.msra.mxu1 %v1806_v25  ;;  %v645_v40 = vld [vmem:[%s2449_s4 + $0x30] sm:$0xff]  ;;  %v646_v41 = vld [vmem:[%s2449_s4 + $0x38] sm:$0xff]  ;;  %v339_v44 = vld [vmem:[%s2447_s2 + $0x20] sm:$0xff] }
  0x25   : > { %1733 = vmatpush3.bf16.msra.mxu0 %v1730_v5  ;;  %vm327_vm2 = vcmp.ge.f32.partialorder %v2095_v14, 0.0  ;;  %v331_v19 = vmul.f32 %v328_v11, %v2095_v14  ;;  %1811 = vmatprep.subr.bf16.mxu1 %v1810_v36  ;;  %v340_v45 = vld [vmem:[%s2447_s2 + $0x28] sm:$0xff]  ;;  %v1818_v46 = vpack.c.bf16 %v646_v41, %v645_v40  ;;  %v647_v47 = vld [vmem:[%s2449_s4 + $0x40] sm:$0xff]  ;;  %v341_v50 = vld [vmem:[%s2447_s2 + $0x30] sm:$0xff] }
  0x26   : > { %1735 = vmatprep.subr.bf16.mxu0 %v1734_v8  ;;  %v2113_v22 = vsel %vm325_vm0, %v2091_v12, %v329_v15  ;;  %v2116_v23 = vsel %vm326_vm1, %v2093_v13, %v330_v16  ;;  %v648_v48 = vld [vmem:[%s2449_s4 + $0x48] sm:$0xff]  ;;  %v1750_v49 = vpack.c.bf16 %v340_v45, %v339_v44  ;;  %v342_v51 = vld [vmem:[%s2447_s2 + $0x38] sm:$0xff]  ;;  %v1323_v54 = vld [vmem:[%s2447_s2 + $0x80] sm:$0xff] }
  0x27   : > { %v356_v28 = vrot.slane %v2113_v22, 1  ;;  %v357_v29 = vrot.slane %v2116_v23, 1  ;;  %v2130_v30 = vsel %vm327_vm2, %v2095_v14, %v331_v19  ;;  %v1822_v52 = vpack.c.bf16 %v648_v48, %v647_v47  ;;  %v1324_v55 = vld [vmem:[%s2447_s2 + $0x88] sm:$0xff]  ;;  %v1325_v59 = vld [vmem:[%s2447_s2 + $0x90] sm:$0xff]  ;;  %v1326_v60 = vld [vmem:[%s2447_s2 + $0x98] sm:$0xff] }
  0x28   : > { %v359_v32 = vrot.slane %v2130_v30, 1  ;;  %1813 = vmatpush3.bf16.msra.mxu1 %v1810_v36  ;;  %v1754_v53 = vpack.c.bf16 %v342_v51, %v341_v50  ;;  %v1758_v56 = vpack.c.bf16 %v1324_v55, %v1323_v54  ;;  %v530_v57 = vrot.slane %v2113_v22, 2  ;;  %v1327_v63 = vld [vmem:[%s2447_s2 + $0xa0] sm:$0xff]  ;;  %v1328_v0 = vld [vmem:[%s2447_s2 + $0xa8] sm:$0xff]  ;;  %v1329_v2 = vld [vmem:[%s2447_s2 + $0xb0] sm:$0xff] }
  0x29   : > { %1737 = vmatpush3.bf16.msra.mxu0 %v1734_v8  ;;  %v358_v34 = vsel %vm355_vm3, %v356_v28, %v357_v29  ;;  %1815 = vmatprep.subr.bf16.mxu1 %v1814_v39  ;;  %v531_v58 = vrot.slane %v2116_v23, 2  ;;  %v1762_v61 = vpack.c.bf16 %v1326_v60, %v1325_v59  ;;  %v1766_v1 = vpack.c.bf16 %v1328_v0, %v1327_v63  ;;  %v1330_v3 = vld [vmem:[%s2447_s2 + $0xb8] sm:$0xff]  ;;  %v1334_v5 = vld [vmem:[%s2449_s4 + $0x80] sm:$0xff]  ;;  %v1335_v6 = vld [vmem:[%s2449_s4 + $0x88] sm:$0xff] }
  0x2a   : > { %1739 = vmatprep.subr.bf16.mxu0 %v1738_v17  ;;  %1523 = vmatprep.mubr.msk.f32.mxu0 %vm361_vm4, %v358_v34  ;;  %v360_v42 = vsel %vm355_vm3, %v357_v29, %v359_v32  ;;  %v1770_v4 = vpack.c.bf16 %v1330_v3, %v1329_v2  ;;  %v533_v7 = vrot.slane %v2130_v30, 2  ;;  %v1774_v8 = vpack.c.bf16 %v1335_v6, %v1334_v5  ;;  %v1336_v9 = vld [vmem:[%s2449_s4 + $0x90] sm:$0xff]  ;;  %v1337_v10 = vld [vmem:[%s2449_s4 + $0x98] sm:$0xff]  ;;  %v1338_v16 = vld [vmem:[%s2449_s4 + $0xa0] sm:$0xff] }
  0x2b   : > { %v532_v62 = vsel %vm529_vm5, %v530_v57, %v531_v58  ;;  %v1778_v15 = vpack.c.bf16 %v1337_v10, %v1336_v9  ;;  %v1340_v19 = vld [vmem:[%s2449_s4 + $0xb0] sm:$0xff]  ;;  %v1341_v20 = vld [vmem:[%s2449_s4 + $0xb8] sm:$0xff]  ;;  %v651_v30 = vld [vmem:[%s2449_s4 + $0x60] sm:$0xff]  ;;  %v1985_v34 = vmov 0.0   ;;  %v963_v2 = vrot.slane %v2093_v13, 1 }
  0x2c   : > { %1817 = vmatpush3.bf16.msra.mxu1 %v1814_v39  ;;  %v534_v11 = vsel %vm529_vm5, %v531_v58, %v533_v7  ;;  %v1786_v21 = vpack.c.bf16 %v1341_v20, %v1340_v19  ;;  %v649_v25 = vld [vmem:[%s2449_s4 + $0x50] sm:$0xff]  ;;  %v650_v26 = vld [vmem:[%s2449_s4 + $0x58] sm:$0xff]  ;;  %v652_v32 = vld [vmem:[%s2449_s4 + $0x68] sm:$0xff]  ;;  %632 = vst [vmem:[#allocation2] sm:$0x1] %v1985_v34 }
  0x2d   : > { %1741 = vmatpush3.bf16.msra.mxu0 %v1738_v17  ;;  %1819 = vmatprep.subr.bf16.mxu1 %v1818_v46  ;;  %v1339_v17 = vld [vmem:[%s2449_s4 + $0xa8] sm:$0xff]  ;;  %v1826_v27 = vpack.c.bf16 %v650_v26, %v649_v25  ;;  %v1344_v28 = vld [vmem:[%s2449_s4 + $0xd0] sm:$0xff]  ;;  %v1345_v29 = vld [vmem:[%s2449_s4 + $0xd8] sm:$0xff]  ;;  %v1830_v33 = vpack.c.bf16 %v652_v32, %v651_v30  ;;  %633 = vst [vmem:[#allocation2 + $0x11] sm:$0x1] %v1985_v34 }
  0x2e   : > { %1743 = vmatprep.subr.bf16.mxu0 %v1742_v35  ;;  %v1782_v18 = vpack.c.bf16 %v1339_v17, %v1338_v16  ;;  %v1794_v31 = vpack.c.bf16 %v1345_v29, %v1344_v28  ;;  %v1347_v36 = vld [vmem:[%s2449_s4 + $0xe8] sm:$0xff]  ;;  %v653_v37 = vld [vmem:[%s2449_s4 + $0x70] sm:$0xff]  ;;  %v654_v39 = vld [vmem:[%s2449_s4 + $0x78] sm:$0xff] }
  0x2f   : > { %v1348_v40 = vld [vmem:[%s2449_s4 + $0xf0] sm:$0xff]  ;;  %v1349_v41 = vld [vmem:[%s2449_s4 + $0xf8] sm:$0xff]  ;;  %v1350_v44 = vld [vmem:[%s2449_s4 + $0x100] sm:$0xff] }
  0x30   : > { %1524 = vmatmul.mubr.msk.f32.vlgmr.msra.gmra.mrb[0].mxu0 %vm361_vm4, %v360_v42  ;;  %1821 = vmatpush3.bf16.msra.mxu1 %v1818_v46  ;;  %v1834_v42 = vpack.c.bf16 %v654_v39, %v653_v37  ;;  %v1351_v45 = vld [vmem:[%s2449_s4 + $0x108] sm:$0xff]  ;;  %v1367_v47 = vld [vmem:[%s2451_s6 + $0x40] sm:$0xff]  ;;  %v1352_v60 = vld [vmem:[%s2449_s4 + $0x110] sm:$0xff] }
  0x31   : > { %1745 = vmatpush3.bf16.msra.mxu0 %v1742_v35  ;;  %1542 = vmatprep.mubr.msk.f32.mxu0 %vm361_vm4, %v2113_v22  ;;  %v1342_v22 = vld [vmem:[%s2449_s4 + $0xc0] sm:$0xff]  ;;  %v1838_v46 = vpack.c.bf16 %v1351_v45, %v1350_v44  ;;  %v1368_v48 = vld [vmem:[%s2451_s6 + $0x48] sm:$0xff]  ;;  %v1369_v63 = vld [vmem:[%s2451_s6 + $0x50] sm:$0xff] }
  0x32   : > { %1747 = vmatprep.subr.bf16.mxu0 %v1746_v43  ;;  %1823 = vmatprep.subr.bf16.mxu1 %v1822_v52  ;;  %v1346_v35 = vld [vmem:[%s2449_s4 + $0xe0] sm:$0xff]  ;;  %v1370_v0 = vld [vmem:[%s2451_s6 + $0x58] sm:$0xff]  ;;  %v1373_v28 = vld [vmem:[%s2451_s6 + $0x70] sm:$0xff] }
  0x33   : > { %v1798_v38 = vpack.c.bf16 %v1347_v36, %v1346_v35  ;;  %v1333_v50 = vld [vmem:[%s2448_s3] ss:$0 sm:$0xff]  ;;  %v1874_v16 = vpack.c.bf16 %v1370_v0, %v1369_v63  ;;  %v1357_v25 = vld [vmem:[%s2449_s4 + $0x138] sm:$0xff]  ;;  %v1360_v34 = vld [vmem:[%s2449_s4 + $0x150] sm:$0xff]  ;;  %v965_v36 = vrot.slane %v2095_v14, 1  ;;  %v1135_v63 = vrot.slane %v2093_v13, 2 }
  0x34   : > { %1825 = vmatpush3.bf16.msra.mxu1 %v1822_v52  ;;  %v627_v52 = vstv %s1310_s18  ;;  %v1374_v29 = vld [vmem:[%s2451_s6 + $0x78] sm:$0xff]  ;;  %v1358_v30 = vld [vmem:[%s2449_s4 + $0x140] sm:$0xff]  ;;  %v1363_v39 = vld [vmem:[%s2449_s4 + $0x168] sm:$0xff] }
  0x35   : > { %1749 = vmatpush3.bf16.msra.mxu0 %v1746_v43  ;;  %1827 = vmatprep.subr.bf16.mxu1 %v1826_v27  ;;  %v1802_v43 = vpack.c.bf16 %v1349_v41, %v1348_v40  ;;  %v1882_v32 = vpack.c.bf16 %v1374_v29, %v1373_v28  ;;  %v1361_v35 = vld [vmem:[%s2449_s4 + $0x158] sm:$0xff]  ;;  %v966_v40 = vsel %vm355_vm3, %v963_v2, %v965_v36  ;;  %v942_v45 = vld [vmem:[%s2451_s6] sm:$0xff]  ;;  %v1381_v0 = vld [vmem:[%s2451_s6 + $0x90] sm:$0xff] }
  0x36   : > { %1751 = vmatprep.subr.bf16.mxu0 %v1750_v49  ;;  %v1858_v37 = vpack.c.bf16 %v1361_v35, %v1360_v34 }
  0x38   : > { %1829 = vmatpush3.bf16.msra.mxu1 %v1826_v27 }
  0x39   : > { %1753 = vmatpush3.bf16.msra.mxu0 %v1750_v49  ;;  %1831 = vmatprep.subr.bf16.mxu1 %v1830_v33  ;;  %v1870_v49 = vpack.c.bf16 %v1368_v48, %v1367_v47 }
  0x3a   : > { %1755 = vmatprep.subr.bf16.mxu0 %v1754_v53 }
  0x3c   : > { %1833 = vmatpush3.bf16.msra.mxu1 %v1830_v33 }
  0x3d   : > { %1757 = vmatpush3.bf16.msra.mxu0 %v1754_v53  ;;  %1835 = vmatprep.subr.bf16.mxu1 %v1834_v42 }
  0x3e   : > { %1759 = vmatprep.subr.bf16.mxu0 %v1758_v56 }
  0x40   : > { %1543 = vmatmul.mubr.msk.f32.vlgmr.msra.gmra.mrb[0].mxu0 %vm361_vm4, %v2116_v23  ;;  %v1343_v23 = vld [vmem:[%s2449_s4 + $0xc8] sm:$0xff]  ;;  %1837 = vmatpush3.bf16.msra.mxu1 %v1834_v42  ;;  %v1364_v42 = vld [vmem:[%s2449_s4 + $0x170] sm:$0xff] }
  0x41   : > { %1761 = vmatpush3.bf16.msra.mxu0 %v1758_v56  ;;  %1561 = vmatprep.mubr.msk.f32.mxu0 %vm361_vm4, %v532_v62  ;;  %v1790_v24 = vpack.c.bf16 %v1343_v23, %v1342_v22  ;;  %v1371_v22 = vld [vmem:[%s2451_s6 + $0x60] sm:$0xff]  ;;  %v1372_v23 = vld [vmem:[%s2451_s6 + $0x68] sm:$0xff] }
  0x42   : > { %1763 = vmatprep.subr.bf16.mxu0 %v1762_v61  ;;  %1839 = vmatprep.subr.bf16.mxu1 %v1838_v46  ;;  %v1878_v26 = vpack.c.bf16 %v1372_v23, %v1371_v22 }
  0x45   : > { %1765 = vmatpush3.bf16.msra.mxu0 %v1762_v61  ;;  %v1353_v61 = vld [vmem:[%s2449_s4 + $0x118] sm:$0xff] }
  0x46   : > { %1767 = vmatprep.subr.bf16.mxu0 %v1766_v1  ;;  %v1842_v6 = vpack.c.bf16 %v1353_v61, %v1352_v60  ;;  %v1380_v60 = vld [vmem:[%s2451_s6 + $0x88] sm:$0xff] }
  0x49   : > { %1769 = vmatpush3.bf16.msra.mxu0 %v1766_v1  ;;  %v962_v1 = vrot.slane %v2091_v12, 1 }
  0x4a   : > { %1771 = vmatprep.subr.bf16.mxu0 %v1770_v4 }
  0x4b   : > { %v964_v20 = vsel %vm355_vm3, %v962_v1, %v963_v2  ;;  %v1382_v1 = vld [vmem:[%s2451_s6 + $0x98] sm:$0xff] }
  0x4c   : > { %v1906_v2 = vpack.c.bf16 %v1382_v1, %v1381_v0 }
  0x4d   : > { %1773 = vmatpush3.bf16.msra.mxu0 %v1770_v4 }
  0x4e   : > { %1775 = vmatprep.subr.bf16.mxu0 %v1774_v8 }
  0x50   : > { %1562 = vmatmul.mubr.msk.f32.vlgmr.msra.gmra.mrb[0].mxu0 %vm361_vm4, %v534_v11  ;;  %v1354_v11 = vld [vmem:[%s2449_s4 + $0x120] sm:$0xff] }
  0x51   : > { %1777 = vmatpush3.bf16.msra.mxu0 %v1774_v8 }
  0x52   : > { %1779 = vmatprep.subr.bf16.mxu0 %v1778_v15 }
  0x55   : > { %1781 = vmatpush3.bf16.msra.mxu0 %v1778_v15  ;;  %v1355_v15 = vld [vmem:[%s2449_s4 + $0x128] sm:$0xff] }
  0x56   : > { %1783 = vmatprep.subr.bf16.mxu0 %v1782_v18 }
  0x59   : > { %1785 = vmatpush3.bf16.msra.mxu0 %v1782_v18 }
  0x5a   : > { %1787 = vmatprep.subr.bf16.mxu0 %v1786_v21 }
  0x5d   : > { %1789 = vmatpush3.bf16.msra.mxu0 %v1786_v21  ;;  %v1846_v21 = vpack.c.bf16 %v1355_v15, %v1354_v11 }
  0x5e   : > { %1791 = vmatprep.subr.bf16.mxu0 %v1790_v24 }
  0x61   : > { %1793 = vmatpush3.bf16.msra.mxu0 %v1790_v24  ;;  %v1356_v24 = vld [vmem:[%s2449_s4 + $0x130] sm:$0xff] }
  0x62   : > { %1795 = vmatprep.subr.bf16.mxu0 %v1794_v31  ;;  %v1850_v27 = vpack.c.bf16 %v1357_v25, %v1356_v24 }
  0x65   : > { %1797 = vmatpush3.bf16.msra.mxu0 %v1794_v31  ;;  %v1359_v31 = vld [vmem:[%s2449_s4 + $0x148] sm:$0xff] }
  0x66   : > { %1799 = vmatprep.subr.bf16.mxu0 %v1798_v38  ;;  %v1854_v33 = vpack.c.bf16 %v1359_v31, %v1358_v30 }
  0x69   : > { %1801 = vmatpush3.bf16.msra.mxu0 %v1798_v38  ;;  %v1362_v38 = vld [vmem:[%s2449_s4 + $0x160] sm:$0xff] }
  0x6a   : > { %1803 = vmatprep.subr.bf16.mxu0 %v1802_v43  ;;  %v1862_v41 = vpack.c.bf16 %v1363_v39, %v1362_v38 }
  0x6d   : > { %1805 = vmatpush3.bf16.msra.mxu0 %v1802_v43  ;;  %v1365_v43 = vld [vmem:[%s2449_s4 + $0x178] sm:$0xff] }
  0x6e   : > { %1871 = vmatprep.subr.bf16.mxu0 %v1870_v49  ;;  %v1866_v44 = vpack.c.bf16 %v1365_v43, %v1364_v42 }
 0x123   : > { %v1563_v51 = vpop.f32.mrb[0].mxu0 }
 0x124   : > { %v624_v53 = vadd.f32 %v1563_v51, %v1333_v50  ;;  %v605_v54 = vpop.f32.mrb[1].mxu0 }
 0x125   : > { %v623_v55 = vadd.f32 %v1333_v50, %v605_v54  ;;  %v945_v50 = vld [vmem:[%s2451_s6 + $0x18] sm:$0xff]  ;;  %v947_v54 = vld [vmem:[%s2451_s6 + $0x28] sm:$0xff] }
 0x126   : > { %vm626_vm6 = vcmp.ge.f32.partialorder %v624_v53, 0.0  ;;  %v629_v56 = vmul.f32 %v627_v52, %v624_v53 }
 0x127   : > { %vm625_vm7 = vcmp.ge.f32.partialorder %v623_v55, 0.0  ;;  %v628_v57 = vmul.f32 %v627_v52, %v623_v55 }
 0x128   : > { %v631_v58 = vsel %vm626_vm6, %v624_v53, %v629_v56  ;;  %v946_v53 = vld [vmem:[%s2451_s6 + $0x20] sm:$0xff]  ;;  %v948_v56 = vld [vmem:[%s2451_s6 + $0x30] sm:$0xff] }
 0x129   : > { %635 = vst [vmem:[#allocation2 + $0x9] sm:$0xff] %v631_v58  ;;  %v630_v59 = vsel %vm625_vm7, %v623_v55, %v628_v57  ;;  %v1894_v55 = vpack.c.bf16 %v947_v54, %v946_v53  ;;  %v949_v57 = vld [vmem:[%s2451_s6 + $0x38] sm:$0xff] }
 0x12a   : > { %634 = vst [vmem:[#allocation2 + $0x1] sm:$0xff] %v630_v59  ;;  %v1898_v58 = vpack.c.bf16 %v949_v57, %v948_v56  ;;  %v1379_v59 = vld [vmem:[%s2451_s6 + $0x80] sm:$0xff] }
 0x12b   : > { %v1902_v61 = vpack.c.bf16 %v1380_v60, %v1379_v59 }
 0x130   : > { %v2295_v62 = vld [vmem:[#allocation2 + $0x10] sm:$0x3] }
 0x131   : > { %v636_v3 = vld [vmem:[#allocation2] sm:$0xff]  ;;  %v2305_v4 = vld [vmem:[#allocation2 + $0x8] sm:$0xff]  ;;  %v678_v5 = vrot.slane %v2295_v62, 1  ;;  %v852_v48 = vrot.slane %v2295_v62, 2  ;;  %v1134_v62 = vrot.slane %v2091_v12, 2 }
 0x132   : > { %v675_v7 = vrot.slane %v636_v3, 1  ;;  %1631 = vmatprep.mubr.f32.mxu1 %v636_v3  ;;  %v849_v8 = vrot.slane %v636_v3, 2  ;;  %v676_v9 = vrot.slane %v2305_v4, 1  ;;  %v850_v10 = vrot.slane %v2305_v4, 2 }
 0x133   : > { %1632 = vmatmul.mubr.f32.vlgmr.msra.gmra.mrb[0].mxu1 %v2305_v4  ;;  %v1136_v3 = vsel %vm529_vm5, %v1134_v62, %v1135_v63  ;;  %v1383_v4 = vld [vmem:[%s2451_s6 + $0xa0] sm:$0xff] }
 0x134   : > { %1841 = vmatpush3.bf16.msra.mxu1 %v1838_v46  ;;  %v677_v17 = vsel %vm355_vm3, %v675_v7, %v676_v9  ;;  %v851_v18 = vsel %vm529_vm5, %v849_v8, %v850_v10  ;;  %v679_v19 = vsel %vm355_vm3, %v676_v9, %v678_v5  ;;  %v943_v46 = vld [vmem:[%s2451_s6 + $0x8] sm:$0xff]  ;;  %v853_v52 = vsel %vm529_vm5, %v850_v10, %v852_v48  ;;  %v1386_v7 = vld [vmem:[%s2451_s6 + $0xb8] sm:$0xff] }
 0x135   : > { %1596 = vmatprep.mubr.f32.mxu0 %v677_v17  ;;  %1666 = vmatprep.mubr.f32.mxu1 %v851_v18  ;;  %v1886_v47 = vpack.c.bf16 %v943_v46, %v942_v45  ;;  %v1137_v9 = vrot.slane %v2095_v14, 2  ;;  %v1366_v18 = vld [vmem:[%s2450_s5] ss:$0 sm:$0xff] }
 0x136   : > { %1597 = vmatmul.mubr.f32.vlgmr.msra.gmra.mrb[2].mxu0 %v679_v19  ;;  %1843 = vmatprep.subr.bf16.mxu1 %v1842_v6 }
 0x137   : > { %1873 = vmatpush3.bf16.msra.mxu0 %v1870_v49  ;;  %1685 = vmatprep.mubr.msk.f32.mxu0 %vm361_vm4, %v964_v20  ;;  %v944_v49 = vld [vmem:[%s2451_s6 + $0x10] sm:$0xff] }
 0x138   : > { %1845 = vmatpush3.bf16.msra.mxu1 %v1842_v6  ;;  %1875 = vmatprep.subr.bf16.mxu0 %v1874_v16  ;;  %v1890_v51 = vpack.c.bf16 %v945_v50, %v944_v49  ;;  %v1385_v6 = vld [vmem:[%s2451_s6 + $0xb0] sm:$0xff] }
 0x139   : > { %1847 = vmatprep.subr.bf16.mxu1 %v1846_v21  ;;  %v1914_v8 = vpack.c.bf16 %v1386_v7, %v1385_v6 }
 0x13b   : > { %1877 = vmatpush3.bf16.msra.mxu0 %v1874_v16 }
 0x13c   : > { %1849 = vmatpush3.bf16.msra.mxu1 %v1846_v21  ;;  %1879 = vmatprep.subr.bf16.mxu0 %v1878_v26 }
 0x13d   : > { %1851 = vmatprep.subr.bf16.mxu1 %v1850_v27 }
 0x13f   : > { %1881 = vmatpush3.bf16.msra.mxu0 %v1878_v26  ;;  %v1389_v26 = vld [vmem:[%s2452_s7] ss:$0 sm:$0xff] }
 0x140   : > { %1853 = vmatpush3.bf16.msra.mxu1 %v1850_v27  ;;  %1883 = vmatprep.subr.bf16.mxu0 %v1882_v32 }
 0x141   : > { %1855 = vmatprep.subr.bf16.mxu1 %v1854_v33 }
 0x143   : > { %1885 = vmatpush3.bf16.msra.mxu0 %v1882_v32 }
 0x144   : > { %1857 = vmatpush3.bf16.msra.mxu1 %v1854_v33 }
 0x145   : > { %1859 = vmatprep.subr.bf16.mxu1 %v1858_v37 }
 0x146   : > { %1686 = vmatmul.mubr.msk.f32.vlgmr.msra.gmra.mrb[4].mxu0 %vm361_vm4, %v966_v40 }
 0x148   : > { %1861 = vmatpush3.bf16.msra.mxu1 %v1858_v37 }
 0x149   : > { %1863 = vmatprep.subr.bf16.mxu1 %v1862_v41 }
 0x14c   : > { %1865 = vmatpush3.bf16.msra.mxu1 %v1862_v41 }
 0x14d   : > { %1867 = vmatprep.subr.bf16.mxu1 %v1866_v44 }
 0x150   : > { %1869 = vmatpush3.bf16.msra.mxu1 %v1866_v44 }
 0x151   : > { %1887 = vmatprep.subr.bf16.mxu1 %v1886_v47 }
 0x153   : > { %1667 = vmatmul.mubr.f32.vlgmr.msra.gmra.mrb[0].mxu1 %v853_v52 }
 0x154   : > { %1889 = vmatpush3.bf16.msra.mxu1 %v1886_v47  ;;  %1704 = vmatprep.mubr.msk.f32.mxu1 %vm361_vm4, %v2091_v12  ;;  %v1384_v12 = vld [vmem:[%s2451_s6 + $0xa8] sm:$0xff] }
 0x155   : > { %1891 = vmatprep.subr.bf16.mxu1 %v1890_v51  ;;  %v1910_v5 = vpack.c.bf16 %v1384_v12, %v1383_v4 }
 0x158   : > { %1893 = vmatpush3.bf16.msra.mxu1 %v1890_v51 }
 0x159   : > { %1895 = vmatprep.subr.bf16.mxu1 %v1894_v55 }
 0x15c   : > { %1897 = vmatpush3.bf16.msra.mxu1 %v1894_v55 }
 0x15d   : > { %1899 = vmatprep.subr.bf16.mxu1 %v1898_v58 }
 0x160   : > { %1901 = vmatpush3.bf16.msra.mxu1 %v1898_v58 }
 0x161   : > { %1903 = vmatprep.subr.bf16.mxu1 %v1902_v61 }
 0x163   : > { %1705 = vmatmul.mubr.msk.f32.vlgmr.msra.gmra.mrb[2].mxu1 %vm361_vm4, %v2093_v13  ;;  %v1138_v13 = vsel %vm529_vm5, %v1135_v63, %v1137_v9 }
 0x164   : > { %1905 = vmatpush3.bf16.msra.mxu1 %v1902_v61  ;;  %1723 = vmatprep.mubr.msk.f32.mxu1 %vm361_vm4, %v1136_v3 }
 0x165   : > { %1907 = vmatprep.subr.bf16.mxu1 %v1906_v2 }
 0x168   : > { %1909 = vmatpush3.bf16.msra.mxu1 %v1906_v2 }
 0x169   : > { %1911 = vmatprep.subr.bf16.mxu1 %v1910_v5 }
 0x16c   : > { %1913 = vmatpush3.bf16.msra.mxu1 %v1910_v5 }
 0x16d   : > { %1915 = vmatprep.subr.bf16.mxu1 %v1914_v8 }
 0x170   : > { %1917 = vmatpush3.bf16.msra.mxu1 %v1914_v8 }
 0x173   : > { %1724 = vmatmul.mubr.msk.f32.vlgmr.msra.gmra.mrb[2].mxu1 %vm361_vm4, %v1138_v13 }
 0x209   : > { %v1598_v10 = vpop.f32.mrb[2].mxu0 }
 0x20a   : > { %v748_v11 = vpop.f32.mrb[3].mxu0 }
 0x219   : > { %v1687_v15 = vpop.f32.mrb[4].mxu0 }
 0x21a   : > { %v1037_v16 = vpop.f32.mrb[5].mxu0 }
 0x226   : > { %v1668_v17 = vpop.f32.mrb[0].mxu1 }
 0x227   : > { %v1918_v19 = vadd.f32 %v1668_v17, %v1598_v10  ;;  %v922_v20 = vpop.f32.mrb[1].mxu1 }
 0x228   : > { %v1923_v21 = vadd.f32 %v922_v20, %v748_v11 }
 0x229   : > { %v1919_v14 = vadd.f32 %v1918_v19, %v1366_v18 }
 0x22a   : > { %v1924_v22 = vadd.f32 %v1923_v21, %v1366_v18 }
 0x22b   : > { %v1920_v23 = vadd.f32 %v1919_v14, %v1687_v15 }
 0x22c   : > { %v1925_v24 = vadd.f32 %v1924_v22, %v1037_v16 }
 0x246   : > { %v1725_v25 = vpop.f32.mrb[2].mxu1 }
 0x247   : > { %v1921_v27 = vadd.f32 %v1920_v23, %v1725_v25  ;;  %v1209_v28 = vpop.f32.mrb[3].mxu1 }
 0x248   : > { %v1926_v29 = vadd.f32 %v1925_v24, %v1209_v28 }
 0x249   : > { %v1922_v30 = vadd.f32 %v1921_v27, %v1389_v26 }
 0x24a   : > { %v1927_v31 = vadd.f32 %v1926_v29, %v1389_v26 }
 0x24b   : > { %1232 = vst [vmem:[%s319_s20 + $0x8] sm:$0xff] %v1922_v30 }
 0x24c   : > { %1231 = vst [vmem:[%s319_s20] sm:$0xff] %v1927_v31 }
 0x24d PF: > { %s19_s27 = sadd.s32 1, %s1982_s27  }
 0x24e   : > { %p16_p1 = scmp.ge.s32.totalorder %s19_s27, 4  }
 0x250   :  { %18 = sbr.rel (!%p16_p1) target bundleno = 1 (0x1), region = 93 }
 0x257   :  { %1254 = vsyncpa [#allocation4], 1 }
 0x258   :  { %1256 = vsyncpa [#allocation4 + $0x1], 1 }

</bundles_post_ra>
